<compile_context>
chip_gen: v7x
topology: tpu7x:2x2x1
jax: 0.10.0
libtpu: 0.0.40
codegen_flags: <defaults>
</compile_context>

<pallas_src>
import numpy as np
import jax
import jax.numpy as jnp
from jax.experimental import pallas as pl
from jax.experimental.pallas import tpu as pltpu

# ---- problem constants (from the PyTorch script) ----
NUM_SEGMENT = 10
TIME_DURATION = 1.0
DELTA_T = TIME_DURATION / NUM_SEGMENT
N0 = 2                  # qubit Hilbert-space dimension (2x2 matrices)
ROWS, LANES = 8, 128    # one f32 vreg tile

_PAULI_X = np.array([[0, 1], [1, 0]], dtype=np.complex128)
_PAULI_Y = np.array([[0, -1j], [1j, 0]], dtype=np.complex128)
_PAULI_Z = np.array([[1, 0], [0, -1]], dtype=np.complex128)


def _control_kernel(par_ref, const_ref, out_ref):
    # par_ref (SMEM, f32[11]): [dt*|n|, omega_0, ..., omega_9]
    # const_ref (VMEM, f32[16,128]):
    #   rows 0-7  : coefficient plane  (row0 lane0/1 = Re/Im tr(T^H),
    #                                   row1 lane0/1 = Re/Im tr(T^H * (-i n_hat.sigma)))
    #   rows 8-15 : phase-offset plane (row1 = -pi/2 so cos -> sin; rest 0)
    s = par_ref[1]
    for x in range(2, NUM_SEGMENT + 1):       # 10 scalar SMEM reads, unrolled
        s = s + par_ref[x]
    alpha = s * par_ref[0]                    # dt * |n| * sum(omega)

    coef = const_ref[pl.ds(0, ROWS), :]
    off = const_ref[pl.ds(ROWS, ROWS), :]

    # One EUP call: row0 -> cos(alpha), row1 -> cos(alpha - pi/2) == sin(alpha).
    ang = jnp.full((ROWS, LANES), alpha, dtype=jnp.float32) + off
    prod = coef * jnp.cos(ang)

    # col lane0 = Re tr(T^H U) (up to global phase), lane1 = Im tr(T^H U)
    col = jnp.sum(prod, axis=0, keepdims=True)          # (1, 128)
    tot = jnp.sum(col * col, axis=1, keepdims=True)     # (1, 1)  == |tr|^2
    loss = jnp.float32(1.0) - tot * jnp.float32(1.0 / (N0 * N0))
    out_ref[...] = jnp.broadcast_to(loss, (ROWS, LANES))


def dummy_control_loss(omega, ham_model, ham_unknown, target_gate):
    """Equivalent of DummyControlModel.forward() with is_calibration=False."""
    h = (np.asarray(ham_model, dtype=np.complex128)
         + np.asarray(ham_unknown, dtype=np.complex128))
    # Pauli decomposition of the Hermitian 2x2 Hamiltonian: H = c0*I + n.sigma
    # (the c0*I part only contributes a global phase and cancels in |tr|^2).
    nx = h[0, 1].real
    ny = h[1, 0].imag
    nz = 0.5 * (h[0, 0] - h[1, 1]).real
    r = float(np.sqrt(nx * nx + ny * ny + nz * nz))
    if r > 0.0:
        nhx, nhy, nhz = nx / r, ny / r, nz / r
    else:
        nhx = nhy = nhz = 0.0

    # Host-folded trace constants:  tr(T^H U) ∝ c1*cos(a) + c2*sin(a)
    p_mat = -1j * (nhx * _PAULI_X + nhy * _PAULI_Y + nhz * _PAULI_Z)
    t_conj = np.conj(np.asarray(target_gate, dtype=np.complex128))
    c1 = np.sum(t_conj * np.eye(N0))          # tr(T^H)
    c2 = np.sum(t_conj * p_mat)               # tr(T^H * (-i n_hat.sigma))

    const = np.zeros((2 * ROWS, LANES), dtype=np.float32)
    const[0, 0] = c1.real
    const[0, 1] = c1.imag
    const[1, 0] = c2.real
    const[1, 1] = c2.imag
    const[ROWS + 1, :] = -np.pi / 2.0          # offset row: cos(a - pi/2) = sin(a)
    const = jnp.asarray(const)

    params = jnp.concatenate([
        jnp.asarray([DELTA_T * r], dtype=jnp.float32),
        jnp.asarray(omega, dtype=jnp.float32),
    ])

    out = pl.pallas_call(
        _control_kernel,
        out_shape=jax.ShapeDtypeStruct((ROWS, LANES), jnp.float32),
        in_specs=[
            pl.BlockSpec(memory_space=pltpu.MemorySpace.SMEM),   # [dt*|n|, omega...]
            pl.BlockSpec(memory_space=pltpu.MemorySpace.VMEM),   # coef + offset planes
        ],
        out_specs=pl.BlockSpec(memory_space=pltpu.MemorySpace.VMEM),
    )(params, const)
    return out[0, 0]


# ---- pure-numpy reference (complex128, per-segment product, Taylor expm) ----
def _np_expm(m, order=30):
    out = np.eye(m.shape[0], dtype=np.complex128)
    term = np.eye(m.shape[0], dtype=np.complex128)
    for k in range(1, order + 1):
        term = term @ m / k
        out = out + term
    return out


def reference_loss(omega, ham_model, ham_unknown, target_gate):
    u = np.eye(N0, dtype=np.complex128)
    h = np.asarray(ham_model) + np.asarray(ham_unknown)
    for x in range(NUM_SEGMENT):
        u = _np_expm(-1j * DELTA_T * float(omega[x]) * h) @ u
    tmp0 = np.trace(np.asarray(target_gate).conj().T @ u)
    return 1.0 - (tmp0 * np.conj(tmp0)).real / (N0 * N0)


if __name__ == "__main__":
    ham_model = 0.5 * _PAULI_X
    target_gate = _PAULI_X
    phi = 2.86514324198955
    u = -0.5846363798417062
    # Deterministic stand-in for self.manifold_H() output (traceless Hermitian 2x2).
    ham_unknown = (u * _PAULI_Z
                   + np.sqrt(1 - u ** 2) * (np.cos(phi) * _PAULI_X
                                            + np.sin(phi) * _PAULI_Y)) / 8

    # omega parameter ~ torch.rand(num_segment), deterministic via PRNGKey(0)
    key = jax.random.PRNGKey(0)
    omega = jax.random.uniform(key, (NUM_SEGMENT,), dtype=jnp.float32)

    loss = dummy_control_loss(omega, ham_model, ham_unknown, target_gate)
    loss = jax.block_until_ready(loss)

    ref = reference_loss(np.asarray(omega, dtype=np.float64),
                         ham_model, ham_unknown, target_gate)
    assert abs(float(loss) - float(ref)) < 1e-4, (float(loss), float(ref))
    print("KERNEL_OK")
</pallas_src>

<mosaic_0001>
module attributes {stable_mosaic.version = 11 : i64} {
  func.func @_control_kernel(%arg0: memref<11xf32, #tpu.memory_space<smem>>, %arg1: memref<16x128xf32, #tpu.memory_space<vmem>>, %arg2: memref<8x128xf32, #tpu.memory_space<vmem>>) attributes {dimension_semantics = [], scalar_prefetch = 0 : i64, scratch_operands = 0 : i64, tpu.core_type = #tpu.core_type<tc>} {
    %c1 = arith.constant 1 : index
    %0 = memref.load %arg0[%c1] : memref<11xf32, #tpu.memory_space<smem>>
    %c2 = arith.constant 2 : index
    %1 = memref.load %arg0[%c2] : memref<11xf32, #tpu.memory_space<smem>>
    %2 = arith.addf %0, %1 : f32
    %c3 = arith.constant 3 : index
    %3 = memref.load %arg0[%c3] : memref<11xf32, #tpu.memory_space<smem>>
    %4 = arith.addf %2, %3 : f32
    %c4 = arith.constant 4 : index
    %5 = memref.load %arg0[%c4] : memref<11xf32, #tpu.memory_space<smem>>
    %6 = arith.addf %4, %5 : f32
    %c5 = arith.constant 5 : index
    %7 = memref.load %arg0[%c5] : memref<11xf32, #tpu.memory_space<smem>>
    %8 = arith.addf %6, %7 : f32
    %c6 = arith.constant 6 : index
    %9 = memref.load %arg0[%c6] : memref<11xf32, #tpu.memory_space<smem>>
    %10 = arith.addf %8, %9 : f32
    %c7 = arith.constant 7 : index
    %11 = memref.load %arg0[%c7] : memref<11xf32, #tpu.memory_space<smem>>
    %12 = arith.addf %10, %11 : f32
    %c8 = arith.constant 8 : index
    %13 = memref.load %arg0[%c8] : memref<11xf32, #tpu.memory_space<smem>>
    %14 = arith.addf %12, %13 : f32
    %c9 = arith.constant 9 : index
    %15 = memref.load %arg0[%c9] : memref<11xf32, #tpu.memory_space<smem>>
    %16 = arith.addf %14, %15 : f32
    %c10 = arith.constant 10 : index
    %17 = memref.load %arg0[%c10] : memref<11xf32, #tpu.memory_space<smem>>
    %18 = arith.addf %16, %17 : f32
    %c0 = arith.constant 0 : index
    %19 = memref.load %arg0[%c0] : memref<11xf32, #tpu.memory_space<smem>>
    %20 = arith.mulf %18, %19 : f32
    %c0_0 = arith.constant 0 : index
    %c0_1 = arith.constant 0 : index
    %21 = vector.load %arg1[%c0_0, %c0_1] : memref<16x128xf32, #tpu.memory_space<vmem>>, vector<8x128xf32>
    %c8_2 = arith.constant 8 : index
    %c0_3 = arith.constant 0 : index
    %22 = vector.load %arg1[%c8_2, %c0_3] : memref<16x128xf32, #tpu.memory_space<vmem>>, vector<8x128xf32>
    %23 = vector.broadcast %20 : f32 to vector<8x128xf32>
    %24 = arith.addf %23, %22 : vector<8x128xf32>
    %25 = math.cos %24 : vector<8x128xf32>
    %26 = arith.mulf %21, %25 : vector<8x128xf32>
    %cst = arith.constant dense<0.000000e+00> : vector<128xf32>
    %27 = vector.multi_reduction <add>, %26, %cst [0] : vector<8x128xf32> to vector<128xf32>
    %28 = vector.shape_cast %27 : vector<128xf32> to vector<1x128xf32>
    %29 = arith.mulf %28, %28 : vector<1x128xf32>
    %cst_4 = arith.constant dense<0.000000e+00> : vector<1xf32>
    %30 = vector.multi_reduction <add>, %29, %cst_4 [1] : vector<1x128xf32> to vector<1xf32>
    %31 = vector.shape_cast %30 : vector<1xf32> to vector<1x1xf32>
    %cst_5 = arith.constant 2.500000e-01 : f32
    %32 = vector.broadcast %cst_5 : f32 to vector<1x1xf32>
    %33 = arith.mulf %31, %32 : vector<1x1xf32>
    %cst_6 = arith.constant 1.000000e+00 : f32
    %34 = vector.broadcast %cst_6 : f32 to vector<1x1xf32>
    %35 = arith.subf %34, %33 : vector<1x1xf32>
    %36 = vector.shape_cast %35 : vector<1x1xf32> to vector<1x1xf32>
    %37 = vector.broadcast %36 : vector<1x1xf32> to vector<8x128xf32>
    %c0_7 = arith.constant 0 : index
    %c0_8 = arith.constant 0 : index
    %38 = vector.load %arg2[%c0_7, %c0_8] : memref<8x128xf32, #tpu.memory_space<vmem>>, vector<8x128xf32>
    tpu.vector_store %arg2[%c0_7, %c0_8], %37 {strides = array<i32>} : memref<8x128xf32, #tpu.memory_space<vmem>>, vector<8x128xf32>,
    return
  }
}

</mosaic_0001>

<bundles_post_ra>
// kernel: tpu_custom_call.1
= control target key start
LH: loop header
LB: loop body
LE: loop exit
PB: predicated region body
PF: predicated region fallthrough
CT: control target
= control target key end

     0   :  { %7 = vsyncpa [#allocation5], 0  ;;  %s370_s0 = inlined_call_operand.hbm [shape: f32[11], index: 0, kind: input, shape index: {}]   ;;  %s371_s1 = inlined_call_operand.hbm [shape: f32[16,128], index: 1, kind: input, shape index: {}]   ;;  %s372_s2 = inlined_call_operand.hbm [shape: f32[8,128], index: 2, kind: output, shape index: {}]  }
   0x1   :  { %8 = vsyncpa [#allocation3], 0 }
   0x2   :  { %9 = vsyncpa [#allocation4], 0  ;;  %s227_s11 = scalar_lea.hbm %s370_s0, 16 }
   0x3   :  { %p228_p0 = scmp.ne.s32.totalorder %s370_s0, %s227_s11  ;;  %p231_p1 = scmp.lt.u32.totalorder %s227_s11, %s370_s0 }
   0x5   :  { %p233_p2 = pnand %p231_p1, %p228_p0 }
   0x7   :  { %236 = shalt.err (!%p233_p2)
}
   0x8   :  { %s287_s16 = smov [#allocation2]   ;;  %s288_s19 = smov [#allocation6]  }
   0x9   :  { %17 = dma.hbm_to_smem %s370_s0, 16, %s287_s16, [#allocation5]  }
   0xa   :  { %s23_s20 = sshll.u32 %s288_s19, 4  ;;  %s237_s23 = scalar_lea.hbm %s371_s1, 256  ;;  %s24_s20 = int_to_ptr.vmem [resolvable:$true] %s23_s20 }
   0xb   :  { %p238_p3 = scmp.ne.s32.totalorder %s371_s1, %s237_s23  ;;  %p241_p4 = scmp.lt.u32.totalorder %s237_s23, %s371_s1 }
   0xd   :  { %p243_p5 = pnand %p241_p4, %p238_p3 }
   0xf   :  { %246 = shalt.err (!%p243_p5)
}
  0x10   :  { %s247_s28 = scalar_lea.vmem %s24_s20, 256  ;;  %p252_p7 = scmp.lt.s32.totalorder %s24_s20, %s24_s20 }
  0x11   :  { %p248_p6 = scmp.ne.s32.totalorder %s24_s20, %s247_s28  ;;  %p253_p8 = scmp.lt.s32.totalorder %s247_s28, %s247_s28 }
  0x13   :  { %p254_p9 = por %p253_p8, %p252_p7 }
  0x15   :  { %p255_p10 = pnand %p254_p9, %p248_p6 }
  0x17   :  { %258 = shalt.err (!%p255_p10)
}
  0x18   :  { %s289_s0 = smov 128   ;;  %s290_s29 = smov 8  }
  0x19   :  { %29 = dma.hbm_to_vmem [thread:$0]  %s371_s1, 256, %s24_s20, [#allocation3], %s289_s0, %s289_s0, %s290_s29  }
  0x1a   :  { %281 = dma.done.wait [#allocation5], 16  }
  0x1b   :  { %282 = vsyncadd [#allocation5], 4294967280 }
  0x1c   :  { %283 = dma.done.wait [#allocation3], 256  }
  0x1d   :  { %284 = vsyncadd [#allocation3], 4294967040 }
  0x1e   :  { %36 = sfence }
  0x1f   :  { %s194_s4 = sld [smem:[#allocation2 + $0x1]]  ;;  %s195_s5 = sld [smem:[#allocation2 + $0x2]]  ;;  %v59_v0 = vld [vmem:[#allocation6 + $0x8] sm:$0xff]  ;;  %v291_v14 = vmov 683565275  }
  0x20   :  { %s196_s6 = sld [smem:[#allocation2 + $0x3]]  ;;  %s197_s7 = sld [smem:[#allocation2 + $0x4]]  ;;  %v292_v16 = vmov 2475754826   ;;  %v293_v18 = vmov 2131351028  }
  0x21   :  { %s198_s8 = sld [smem:[#allocation2 + $0x5]]  ;;  %s199_s10 = sld [smem:[#allocation2 + $0x6]]  ;;  %v294_v20 = vmov 2102212464   ;;  %v295_v22 = vmov 920167782  }
  0x22   :  { %s200_s12 = sld [smem:[#allocation2 + $0x7]]  ;;  %s201_s14 = sld [smem:[#allocation2 + $0x8]]  ;;  %v296_v29 = vmov 1326507024  }
  0x23   :  { %s202_s16 = sld [smem:[#allocation2 + $0x9]]  ;;  %s203_s1 = sld [smem:[#allocation2 + $0xa]] }
  0x24   :  { %s56_s19 = sld [smem:[#allocation2]]  ;;  %s297_s24 = smov [#allocation7]  }
  0x25   :  { %s39_s9 = sadd.f32 %s195_s5, %s194_s4  ;;  %s184_s25 = sshll.u32 %s297_s24, 4  ;;  %s185_s25 = int_to_ptr.vmem [resolvable:$true] %s184_s25 }
  0x26   :  { %s259_s26 = scalar_lea.vmem %s185_s25, 128  ;;  %p264_p12 = scmp.lt.s32.totalorder %s185_s25, %s185_s25 }
  0x27   :  { %s41_s11 = sadd.f32 %s196_s6, %s39_s9  ;;  %p260_p11 = scmp.ne.s32.totalorder %s185_s25, %s259_s26 }
  0x28   :  { %p265_p13 = scmp.lt.s32.totalorder %s259_s26, %s259_s26 }
  0x29   :  { %s43_s13 = sadd.f32 %s197_s7, %s41_s11 }
  0x2a   :  { %p266_p0 = por %p265_p13, %p264_p12 }
  0x2b   :  { %s45_s15 = sadd.f32 %s198_s8, %s43_s13 }
  0x2c   :  { %p267_p1 = pnand %p266_p0, %p260_p11 }
  0x2d   :  { %s47_s17 = sadd.f32 %s199_s10, %s45_s15 }
  0x2f   :  { %s49_s18 = sadd.f32 %s200_s12, %s47_s17 }
  0x31   :  { %s51_s20 = sadd.f32 %s201_s14, %s49_s18 }
  0x33   :  { %s53_s21 = sadd.f32 %s202_s16, %s51_s20 }
  0x35   :  { %s55_s22 = sadd.f32 %s203_s1, %s53_s21 }
  0x37   :  { %s57_s23 = smul.f32 %s56_s19, %s55_s22 }
  0x39   :  { %v60_v1 = vstv %s57_s23 }
  0x3a   :  { %v337_v2 = vadd.f32 %v60_v1, %v59_v0 }
  0x3c   :  { %v65_v3 = vand.u32 2139095040, %v337_v2  ;;  %v62_v5 = vand.u32 2147483647, %v337_v2  ;;  %vm64_vm7 = vcmp.lt.s32.totalorder %v337_v2, 0  ;;  %vm154_vm12 = vweird.f32 %v337_v2 }
  0x3e   :  { %v66_v4 = vshrl.u32 %v65_v3, 23  ;;  %v69_v8 = vand.u32 8388607, %v62_v5  ;;  %vm63_vm8 = vcmp.le.f32.partialorder %v62_v5, 0.7853982 }
  0x40   :  { %v204_v6 = vadd.s32 4294967169, %v66_v4  ;;  %v70_v11 = vor.u32 8388608, %v69_v8 }
  0x42   :  { %v72_v7 = vadd.s32 1, %v204_v6  ;;  %v110_v31 = vshll.u32 %v70_v11, 8 }
  0x44   :  { %vm73_vm0 = vcmp.gt.s32.totalorder %v72_v7, 0 }
  0x45   :  { %v74_v9 = vsel %vm73_vm0, %v72_v7, 0 }
  0x46   :  { %v76_v10 = vand.u32 31, %v74_v9  ;;  %v75_v12 = vshrl.u32 %v74_v9, 5 }
  0x48   :  { %v77_v13 = vsub.s32 32, %v76_v10  ;;  %v79_v15 = vshll.u32 %v291_v14, %v76_v10  ;;  %v82_v17 = vshll.u32 %v292_v16, %v76_v10  ;;  %v85_v19 = vshll.u32 %v293_v18, %v76_v10 }
  0x49   :  { %v88_v21 = vshll.u32 %v294_v20, %v76_v10  ;;  %v91_v23 = vshll.u32 %v295_v22, %v76_v10  ;;  %vm94_vm1 = vcmp.lt.s32.totalorder %v75_v12, 1  ;;  %vm97_vm2 = vcmp.lt.s32.totalorder %v75_v12, 4 }
  0x4a   :  { %v78_v24 = vshrl.u32 %v291_v14, %v77_v13  ;;  %v80_v25 = vshrl.u32 %v292_v16, %v77_v13  ;;  %v83_v26 = vshrl.u32 %v293_v18, %v77_v13  ;;  %v86_v27 = vshrl.u32 %v294_v20, %v77_v13 }
  0x4b   :  { %v89_v28 = vshrl.u32 %v295_v22, %v77_v13  ;;  %v92_v30 = vshrl.u32 %v296_v29, %v77_v13  ;;  %vm95_vm3 = vcmp.lt.s32.totalorder %v75_v12, 2  ;;  %vm96_vm4 = vcmp.lt.s32.totalorder %v75_v12, 3 }
  0x4c   :  { %v81_v32 = vor.u32 %v80_v25, %v79_v15  ;;  %v84_v33 = vor.u32 %v83_v26, %v82_v17  ;;  %v87_v34 = vor.u32 %v86_v27, %v85_v19  ;;  %v58_v27 = vld [vmem:[#allocation6] sm:$0xff] }
  0x4d   :  { %v90_v35 = vor.u32 %v89_v28, %v88_v21  ;;  %v93_v36 = vor.u32 %v92_v30, %v91_v23 }
  0x4e   :  { %v98_v37 = vsel %vm94_vm1, %v78_v24, %v81_v32  ;;  %v99_v38 = vsel %vm97_vm2, %v87_v34, 2102212464  ;;  %v102_v39 = vsel %vm94_vm1, %v81_v32, %v84_v33  ;;  %v106_v40 = vsel %vm94_vm1, %v84_v33, %v87_v34 }
  0x4f   :  { %v100_v41 = vsel %vm96_vm4, %v84_v33, %v99_v38  ;;  %v103_v42 = vsel %vm97_vm2, %v90_v35, 920167782  ;;  %v107_v43 = vsel %vm97_vm2, %v93_v36, 1326507024 }
  0x50   :  { %v104_v44 = vsel %vm96_vm4, %v87_v34, %v103_v42  ;;  %v108_v45 = vsel %vm96_vm4, %v90_v35, %v107_v43  ;;  %v101_v46 = vsel %vm95_vm3, %v98_v37, %v100_v41 }
  0x51   :  { %v105_v47 = vsel %vm95_vm3, %v102_v39, %v104_v44  ;;  %v109_v48 = vsel %vm95_vm3, %v106_v40, %v108_v45  ;;  %v117_v53 = vmul.u32 %v110_v31, %v101_v46 }
  0x52   :  { %v343_v49 = vmul.u32.u64.low %v110_v31, %v109_v48  ;;  %v344_v50 = vmul.u32.u64.high %v110_v31, %v109_v48, %v343_v49  ;;  %v346_v51 = vmul.u32.u64.low %v110_v31, %v105_v47  ;;  %v347_v52 = vmul.u32.u64.high %v110_v31, %v105_v47, %v346_v51 }
  0x54   :  { %vm119_vm5 = vc.u32 %v344_v50, %v346_v51  ;;  %v120_v54 = vadd.s32 1, %v347_v52  ;;  %v118_v1 = vadd.s32 %v346_v51, %v344_v50 }
  0x56   :  { %v121_v55 = vsel %vm119_vm5, %v120_v54, %v347_v52 }
  0x57   :  { %v122_v56 = vadd.s32 %v121_v55, %v117_v53 }
  0x59   :  { %v123_v57 = vadd.s32 536870912, %v122_v56 }
  0x5b   :  { %v124_v58 = vshrl.u32 %v123_v57, 30 }
  0x5d   :  { %v125_v59 = vshll.u32 %v124_v58, 30  ;;  %v148_v17 = vsub.s32 4, %v124_v58 }
  0x5f   :  { %v126_v60 = vsub.s32 %v122_v56, %v125_v59  ;;  %v149_v20 = vsel %vm64_vm7, %v148_v17, %v124_v58 }
  0x60   :  { %v151_v21 = vsel %vm63_vm8, 0, %v149_v20 }
  0x61   :  { %v128_v61 = vsub.s32 0, %v126_v60  ;;  %v155_v22 = vand.u32 3, %v151_v21 }
  0x63   :  { %v205_v62 = vmin.u32 %v128_v61, %v126_v60  ;;  %vm160_vm9 = vcmp.eq.s32.totalorder %v155_v22, 2  ;;  %vm157_vm10 = vcmp.eq.s32.totalorder %v155_v22, 0  ;;  %vm156_vm11 = vcmp.lt.s32.totalorder %v155_v22, 2 }
  0x65   :  { %v130_v63 = vclz %v205_v62 }
  0x67   :  { %v206_v0 = vadd.s32 4294967294, %v130_v63 }
  0x69   :  { %vm207_vm6 = vcmp.lt.s32.totalorder %v206_v0, 0 }
  0x6a   :  { %v133_v3 = vsel %vm207_vm6, 0, %v206_v0 }
  0x6b   :  { %v134_v4 = vsub.s32 32, %v133_v3  ;;  %v135_v6 = vshll.u32 %v126_v60, %v133_v3  ;;  %v138_v7 = vsub.s32 4294967266, %v133_v3 }
  0x6d   :  { %v136_v8 = vshrl.u32 %v118_v1, %v134_v4  ;;  %v139_v9 = vadd.s32 127, %v138_v7 }
  0x6f   :  { %v137_v10 = vor.u32 %v136_v8, %v135_v6  ;;  %v140_v11 = vshll.u32 %v139_v9, 23 }
  0x71   :  { %v141_v12 = vor.u32 4788187, %v140_v11  ;;  %v144_v13 = vcvt.s32.f32 %v137_v10 }
  0x73   :  { %v142_v14 = vand.u32 2147483647, %v141_v12 }
  0x75   :  { %v145_v15 = vmul.f32 %v144_v13, %v142_v14 }
  0x77   :  { %v146_v16 = vxor.u32 2147483648, %v145_v15 }
  0x79   :  { %v147_v18 = vsel %vm64_vm7, %v146_v16, %v145_v15 }
  0x7a   :  { %v150_v19 = vsel %vm63_vm8, %v337_v2, %v147_v18 }
  0x7b   :  { %223 = vcosq.f32 %v150_v19 }
  0x7c   :  { %225 = vsinq.f32 %v150_v19 }
  0x85   :  { %v224_v23 = vpop.eup %223 }
  0x86   :  { %v226_v24 = vpop.eup %225  ;;  %v161_v25 = vxor.u32 2147483648, %v224_v23 }
  0x87   :  { %v158_v26 = vxor.u32 2147483648, %v226_v24 }
  0x88   :  { %v162_v5 = vsel %vm160_vm9, %v161_v25, %v226_v24 }
  0x89   :  { %v159_v28 = vsel %vm157_vm10, %v224_v23, %v158_v26 }
  0x8a   :  { %v163_v29 = vsel %vm156_vm11, %v159_v28, %v162_v5 }
  0x8b   :  { %v164_v30 = vsel %vm154_vm12, nan, %v163_v29 }
  0x8c   :  { %v165_v31 = vmul.f32 %v164_v30, %v58_v27 }
  0x8e   :  { %v166_v32 = vrot.slane %v165_v31, 4 }
  0x90   :  { %v167_v33 = vadd.f32 %v166_v32, %v165_v31 }
  0x92   :  { %v168_v34 = vrot.slane %v167_v33, 2 }
  0x94   :  { %v169_v35 = vadd.f32 %v168_v34, %v167_v33 }
  0x96   :  { %v170_v36 = vrot.slane %v169_v35, 1 }
  0x98   :  { %v171_v37 = vadd.f32 %v170_v36, %v169_v35 }
  0x9a   :  { %v172_v38 = vmul.f32 %v171_v37, %v171_v37 }
  0x9c   :  { %173 = vadd.xlane.f32.xlu0 %v172_v38 }
 0x129   :  { %v174_v39 = vpop.xlane.xlu0 %173 }
 0x12a   :  { %v175_v40 = vmul.f32 0.25, %v174_v39 }
 0x12c   :  { %v176_v41 = vsub.f32 1.0, %v175_v40 }
 0x12e   :  { %177 = vst [vmem:[#allocation7] sm:$0xff] %v176_v41 }
 0x12f   :  { %270 = shalt.err (!%p267_p1)
}
 0x130   :  { %s271_s0 = scalar_lea.hbm %s372_s2, 128 }
 0x131   :  { %p272_p2 = scmp.ne.s32.totalorder %s372_s2, %s271_s0  ;;  %p275_p3 = scmp.lt.u32.totalorder %s271_s0, %s372_s2 }
 0x133   :  { %p277_p4 = pnand %p275_p3, %p272_p2 }
 0x135   :  { %280 = shalt.err (!%p277_p4)
}
 0x136   :  { %187 = dma.vmem_to_hbm [thread:$0]  %s185_s25, 128, %s372_s2, [#allocation4]  }
 0x137   :  { %285 = dma.done.wait [#allocation4], 128  }
 0x138   :  { %286 = vsyncadd [#allocation4], 4294967168 }
 0x139   :  { %191 = vsyncpa [#allocation3], 1 }
 0x13a   :  { %192 = vsyncpa [#allocation4], 1 }
 0x13b   :  { %193 = vsyncpa [#allocation5], 1 }

</bundles_post_ra>
